<compile_context>
chip_gen: v7x
topology: tpu7x:2x2x1
jax: 0.10.0
libtpu: 0.0.40
codegen_flags: <defaults>
</compile_context>

<pallas_src>
import jax
import jax.numpy as jnp
import numpy as np
from jax import lax
from jax.experimental import pallas as pl
from jax.experimental.pallas import tpu as pltpu


def _round_up(n, m):
    return ((n + m - 1) // m) * m


def _make_kernel(*, kernel_size, dilation, cin_p, cout_p, cout, has_downsample):
    K = kernel_size
    P = dilation * (K - 1)          # causal halo width (== Chomp1d size)

    def kernel(x_ref, wa_ref, b1_ref, w2_ref, b2_ref, *rest):
        if has_downsample:
            bd_ref, out_ref, xh_ref, h1h_ref, cat1_ref, cat2_ref = rest
        else:
            out_ref, xh_ref, h1h_ref, cat1_ref, cat2_ref = rest
            bd_ref = None

        T = x_ref.shape[2]
        t_idx = pl.program_id(1)

        # First time tile of each batch row: causal left padding = zero halos.
        if P > 0:
            @pl.when(t_idx == 0)
            def _():
                xh_ref[...] = jnp.zeros_like(xh_ref)
                h1h_ref[...] = jnp.zeros_like(h1h_ref)

        x = x_ref[0]                                      # (cin_p, T) bf16

        # conv1 im2col: tap j reads the input stream shifted left by
        # off = P - j*dilation.  Columns [0, off) come from the carried halo,
        # columns [off, T) directly from this tile's x (no duplicate x slab).
        for j in range(K):
            off = P - j * dilation
            r0 = j * cin_p
            if off > 0:
                cat1_ref[r0:r0 + cin_p, :off] = xh_ref[:, j * dilation:P]
            if off < T:
                cat1_ref[r0:r0 + cin_p, off:] = x[:, :T - off]

        # One MXU matmul gives conv1 pre-activation (top half) and, when a
        # downsample exists, the fused 1x1 residual (bottom half).
        big = jnp.dot(wa_ref[...], cat1_ref[...],
                      preferred_element_type=jnp.float32)
        if has_downsample:
            h1 = jnp.maximum(big[:cout_p] + b1_ref[...], 0.0)
            res = big[cout_p:] + bd_ref[...]
        else:
            h1 = jnp.maximum(big + b1_ref[...], 0.0)
            res = x.astype(jnp.float32)                   # identity residual
        # MaskDropout: identity in eval mode (mask tracking has no effect).
        h1b = h1.astype(jnp.bfloat16)

        # conv2 im2col straight from h1 (bf16) + its carried halo.
        for j in range(K):
            off = P - j * dilation
            r0 = j * cout_p
            if off > 0:
                cat2_ref[r0:r0 + cout_p, :off] = h1h_ref[:, j * dilation:P]
            if off < T:
                cat2_ref[r0:r0 + cout_p, off:] = h1b[:, :T - off]

        h2 = jnp.dot(w2_ref[...], cat2_ref[...],
                     preferred_element_type=jnp.float32)
        h2 = jnp.maximum(h2 + b2_ref[...], 0.0)

        out = jnp.maximum(h2 + res, 0.0)                  # final ReLU
        out_ref[0] = out[:cout].astype(out_ref.dtype)

        # Carry the last P timesteps into the halos for the next time tile.
        if P > 0:
            xh_ref[...] = x[:, T - P:]
            h1h_ref[...] = h1b[:, T - P:]

    return kernel


def _vmem_bytes_estimate(cin_p, cout_p, cout, K, T, P, has_downsample):
    bf, f4 = 2, 4
    wa_rows = 2 * cout_p if has_downsample else cout_p
    est = 2 * cin_p * T * bf                      # x block (double-buffered)
    est += 2 * cout * T * f4                      # out block (double-buffered)
    est += 2 * wa_rows * K * cin_p * bf           # fused conv1(+wd) weight
    est += 2 * cout_p * K * cout_p * bf           # conv2 weight
    est += (K * cin_p + K * cout_p) * T * bf      # im2col slabs (bf16)
    est += (cin_p + cout_p) * max(P, 1) * bf      # halo carries
    est += 4 * cout_p * T * f4                    # f32 temporaries
    est += 6 * cout_p * f4                        # biases
    return est


def _physical_vmem_bytes():
    try:
        return int(pltpu.get_tpu_info().vmem_capacity_bytes)
    except Exception:
        return 64 * 1024 * 1024                   # safe on v5e/v6e/v7x


def temporal_block(x_ncl, params, kernel_size, dilation, *, time_tile=None,
                   out_dtype=jnp.float32):
    """TemporalBlock forward.  x_ncl: (B, Cin, L) f32 in PyTorch NCL layout.
    Returns (B, Cout, L).  Assumes stride=1, padding=dilation*(K-1)."""
    B, Cin, L = x_ncl.shape
    K = kernel_size
    P = dilation * (K - 1)
    Cout = params['w1'].shape[0]
    has_downsample = 'wd' in params
    if not has_downsample and Cin != Cout:
        raise ValueError("identity residual requires Cin == Cout")

    # bf16 sublane tile is (16, 128): pad channels so every im2col tap
    # row-block starts on a tile boundary (unmasked stores).
    cin_p = _round_up(Cin, 16)
    cout_p = _round_up(Cout, 16)

    # Per-generation VMEM budget (v7x: 64 MiB -> ~48 MiB cap; v5e/v6e: 128 MiB
    # -> ~96 MiB cap), with a conservative fallback if the query fails.
    vmem_cap = max(32 * 1024 * 1024, (_physical_vmem_bytes() * 3) // 4)

    if time_tile is None:
        cands = [t for t in (4096, 2048, 1024, 512, 256, 128)
                 if L % t == 0 and t >= P] + [L]
        time_tile = next(
            (t for t in cands
             if _vmem_bytes_estimate(cin_p, cout_p, Cout, K, t, P,
                                     has_downsample) <= vmem_cap), L)
    if L % time_tile != 0:
        raise ValueError("sequence length must be divisible by time_tile")
    if time_tile < P:
        raise ValueError("time_tile must be >= dilation*(kernel_size-1)")
    n_t = L // time_tile

    est = _vmem_bytes_estimate(cin_p, cout_p, Cout, K, time_tile, P,
                               has_downsample)
    vmem_limit = int(min(vmem_cap, max(32 * 1024 * 1024, 2 * est)))

    # Channel-padded bf16 input (pad rows are exact zeros).
    x = jnp.zeros((B, cin_p, L), jnp.bfloat16).at[:, :Cin, :].set(
        x_ncl.astype(jnp.bfloat16))

    # Fused tap weights: w[co, j*C_p + c] = w[co, c, j]; pad rows/cols zero.
    def fuse(w, rows_p, cols_p):                   # w: (co, ci, K)
        co, ci, k = w.shape
        f = jnp.zeros((rows_p, k, cols_p), jnp.float32)
        f = f.at[:co, :, :ci].set(jnp.transpose(w, (0, 2, 1)))
        return f.reshape(rows_p, k * cols_p)

    w1f = fuse(params['w1'], cout_p, cin_p)        # (cout_p, K*cin_p)
    w2f = fuse(params['w2'], cout_p, cout_p)       # (cout_p, K*cout_p)
    if has_downsample:
        # 1x1 downsample lives in the current-time tap (j = K-1) columns.
        wdf = jnp.zeros((cout_p, K, cin_p), jnp.float32)
        wdf = wdf.at[:Cout, K - 1, :Cin].set(params['wd'][:, :, 0])
        wa = jnp.concatenate([w1f, wdf.reshape(cout_p, K * cin_p)], axis=0)
    else:
        wa = w1f
    wa = wa.astype(jnp.bfloat16)
    w2f = w2f.astype(jnp.bfloat16)

    def pad_bias(b):
        return jnp.zeros((cout_p, 1), jnp.float32).at[:Cout, 0].set(b)

    b1 = pad_bias(params['b1'])
    b2 = pad_bias(params['b2'])

    def resident(arr):   # full array + constant index_map -> DMA'd once
        shape = arr.shape
        return pl.BlockSpec(shape, lambda b, t: (0,) * len(shape))

    inputs = [x, wa, b1, w2f, b2]
    in_specs = [
        pl.BlockSpec((1, cin_p, time_tile), lambda b, t: (b, 0, t)),
        resident(wa), resident(b1), resident(w2f), resident(b2),
    ]
    if has_downsample:
        bd = pad_bias(params['bd'])
        inputs.append(bd)
        in_specs.append(resident(bd))

    kernel = _make_kernel(kernel_size=K, dilation=dilation, cin_p=cin_p,
                          cout_p=cout_p, cout=Cout,
                          has_downsample=has_downsample)

    grid_spec = pltpu.PrefetchScalarGridSpec(
        num_scalar_prefetch=0,
        grid=(B, n_t),
        in_specs=in_specs,
        out_specs=pl.BlockSpec((1, Cout, time_tile), lambda b, t: (b, 0, t)),
        scratch_shapes=[
            pltpu.VMEM((cin_p, max(P, 1)), jnp.bfloat16),       # x halo
            pltpu.VMEM((cout_p, max(P, 1)), jnp.bfloat16),      # h1 halo
            pltpu.VMEM((K * cin_p, time_tile), jnp.bfloat16),   # conv1 im2col
            pltpu.VMEM((K * cout_p, time_tile), jnp.bfloat16),  # conv2 im2col
        ],
    )

    return pl.pallas_call(
        kernel,
        out_shape=jax.ShapeDtypeStruct((B, Cout, L), out_dtype),
        grid_spec=grid_spec,
        compiler_params=pltpu.CompilerParams(
            dimension_semantics=("parallel", "arbitrary"),
            vmem_limit_bytes=vmem_limit,
        ),
    )(*inputs)


def weight_norm(v, g):
    # PyTorch weight_norm default dim=0: norm per output channel over (in, k)
    norm = jnp.sqrt(jnp.sum(v * v, axis=(1, 2), keepdims=True))
    return g * v / norm


def make_params(key, Cin, Cout, K):
    ks = jax.random.split(key, 8)
    v1 = 0.01 * jax.random.normal(ks[0], (Cout, Cin, K), jnp.float32)
    g1 = 1.0 + 0.1 * jax.random.normal(ks[1], (Cout, 1, 1), jnp.float32)
    v2 = 0.01 * jax.random.normal(ks[2], (Cout, Cout, K), jnp.float32)
    g2 = 1.0 + 0.1 * jax.random.normal(ks[3], (Cout, 1, 1), jnp.float32)
    params = {
        'w1': weight_norm(v1, g1),
        'b1': 0.05 * jax.random.normal(ks[4], (Cout,), jnp.float32),
        'w2': weight_norm(v2, g2),
        'b2': 0.05 * jax.random.normal(ks[5], (Cout,), jnp.float32),
    }
    if Cin != Cout:
        params['wd'] = 0.01 * jax.random.normal(ks[6], (Cout, Cin, 1), jnp.float32)
        params['bd'] = 0.05 * jax.random.normal(ks[7], (Cout,), jnp.float32)
    return params


def reference(x_ncl, params, K, dilation):
    """Pure-JAX f32 reference matching PyTorch Conv1d + Chomp1d + ReLU semantics."""
    P = dilation * (K - 1)
    dn = ('NCH', 'OIH', 'NCH')

    def conv_chomp(x, w, b, dil, pad):
        y = lax.conv_general_dilated(x, w, (1,), [(pad, pad)],
                                     rhs_dilation=(dil,), dimension_numbers=dn)
        if pad > 0:
            y = y[:, :, :-pad]                              # Chomp1d
        return y + b[None, :, None]

    h = jax.nn.relu(conv_chomp(x_ncl, params['w1'], params['b1'], dilation, P))
    h = jax.nn.relu(conv_chomp(h, params['w2'], params['b2'], dilation, P))
    res = (conv_chomp(x_ncl, params['wd'], params['bd'], 1, 0)
           if 'wd' in params else x_ncl)
    return jax.nn.relu(h + res)


if __name__ == "__main__":
    key = jax.random.PRNGKey(0)
    k1, k2, k3, k4 = jax.random.split(key, 4)

    # Case 1: small shapes, fused 1x1-conv downsample residual (Cin != Cout),
    # single time tile (tile = L), auto tile/VMEM selection.
    B, Cin, Cout, L, K, dil = 2, 4, 8, 16, 3, 2        # padding = dil*(K-1) = 4
    x = jax.random.normal(k1, (B, Cin, L), jnp.float32)
    params = make_params(k2, Cin, Cout, K)
    out = jax.block_until_ready(temporal_block(x, params, K, dil))
    ref = jax.block_until_ready(reference(x, params, K, dil))
    np.testing.assert_allclose(np.asarray(out), np.asarray(ref),
                               atol=5e-2, rtol=2e-2)    # bf16 MXU operands

    # Case 2: identity residual (Cin == Cout) with a real time-tiled grid
    # (4 time tiles of 128 lanes; causal halos carried between tiles).
    B, Cin, Cout, L, K, dil = 2, 8, 8, 512, 3, 4       # padding = 8
    x = jax.random.normal(k3, (B, Cin, L), jnp.float32)
    params = make_params(k4, Cin, Cout, K)
    out = jax.block_until_ready(temporal_block(x, params, K, dil, time_tile=128))
    ref = jax.block_until_ready(reference(x, params, K, dil))
    np.testing.assert_allclose(np.asarray(out), np.asarray(ref),
                               atol=5e-2, rtol=2e-2)

    print("KERNEL_OK")
</pallas_src>

<mosaic_0001>
module attributes {stable_mosaic.version = 11 : i64} {
  func.func @kernel(%arg0: i32, %arg1: i32, %arg2: memref<1x16x16xbf16, #tpu.memory_space<vmem>>, %arg3: memref<32x48xbf16, #tpu.memory_space<vmem>>, %arg4: memref<16x1xf32, #tpu.memory_space<vmem>>, %arg5: memref<16x48xbf16, #tpu.memory_space<vmem>>, %arg6: memref<16x1xf32, #tpu.memory_space<vmem>>, %arg7: memref<16x1xf32, #tpu.memory_space<vmem>>, %arg8: memref<1x8x16xf32, #tpu.memory_space<vmem>>, %arg9: memref<16x4xbf16, #tpu.memory_space<vmem>>, %arg10: memref<16x4xbf16, #tpu.memory_space<vmem>>, %arg11: memref<48x16xbf16, #tpu.memory_space<vmem>>, %arg12: memref<48x16xbf16, #tpu.memory_space<vmem>>) attributes {dimension_semantics = [#tpu.dimension_semantics<parallel>, #tpu.dimension_semantics<arbitrary>], iteration_bounds = array<i64: 2, 1>, scalar_prefetch = 0 : i64, scratch_operands = 4 : i64, tpu.core_type = #tpu.core_type<tc>, window_params = [{transform_indices = @transform_0, window_bounds = array<i64: 1, 16, 16>}, {pipeline_mode = #tpu.pipeline_mode<synchronous>, transform_indices = @transform_1, window_bounds = array<i64: 32, 48>}, {pipeline_mode = #tpu.pipeline_mode<synchronous>, transform_indices = @transform_2, window_bounds = array<i64: 16, 1>}, {pipeline_mode = #tpu.pipeline_mode<synchronous>, transform_indices = @transform_3, window_bounds = array<i64: 16, 48>}, {pipeline_mode = #tpu.pipeline_mode<synchronous>, transform_indices = @transform_4, window_bounds = array<i64: 16, 1>}, {pipeline_mode = #tpu.pipeline_mode<synchronous>, transform_indices = @transform_5, window_bounds = array<i64: 16, 1>}, {transform_indices = @transform_6, window_bounds = array<i64: 1, 8, 16>}]} {
    %c0_i32 = arith.constant 0 : i32
    %0 = arith.cmpi eq, %arg1, %c0_i32 : i32
    %1 = arith.extui %0 : i1 to i32
    %c0_i32_0 = arith.constant 0 : i32
    %2 = arith.cmpi ne, %1, %c0_i32_0 : i32
    scf.if %2 {
      %cst_52 = arith.constant 0.000000e+00 : bf16
      %56 = vector.broadcast %cst_52 : bf16 to vector<16x4xbf16>
      %c0_53 = arith.constant 0 : index
      %c0_54 = arith.constant 0 : index
      %57 = vector.load %arg9[%c0_53, %c0_54] : memref<16x4xbf16, #tpu.memory_space<vmem>>, vector<16x4xbf16>
      tpu.vector_store %arg9[%c0_53, %c0_54], %56 {strides = array<i32>} : memref<16x4xbf16, #tpu.memory_space<vmem>>, vector<16x4xbf16>,
      %cst_55 = arith.constant 0.000000e+00 : bf16
      %58 = vector.broadcast %cst_55 : bf16 to vector<16x4xbf16>
      %c0_56 = arith.constant 0 : index
      %c0_57 = arith.constant 0 : index
      %59 = vector.load %arg10[%c0_56, %c0_57] : memref<16x4xbf16, #tpu.memory_space<vmem>>, vector<16x4xbf16>
      tpu.vector_store %arg10[%c0_56, %c0_57], %58 {strides = array<i32>} : memref<16x4xbf16, #tpu.memory_space<vmem>>, vector<16x4xbf16>,
    } else {
    }
    %c0 = arith.constant 0 : index
    %c0_1 = arith.constant 0 : index
    %c0_2 = arith.constant 0 : index
    %3 = vector.load %arg2[%c0, %c0_1, %c0_2] : memref<1x16x16xbf16, #tpu.memory_space<vmem>>, vector<1x16x16xbf16>
    %4 = vector.shape_cast %3 : vector<1x16x16xbf16> to vector<16x16xbf16>
    %c0_3 = arith.constant 0 : index
    %c0_4 = arith.constant 0 : index
    %5 = vector.load %arg9[%c0_3, %c0_4] : memref<16x4xbf16, #tpu.memory_space<vmem>>, vector<16x4xbf16>
    %c0_5 = arith.constant 0 : index
    %c0_6 = arith.constant 0 : index
    %6 = vector.load %arg11[%c0_5, %c0_6] : memref<48x16xbf16, #tpu.memory_space<vmem>>, vector<16x4xbf16>
    tpu.vector_store %arg11[%c0_5, %c0_6], %5 {strides = array<i32>} : memref<48x16xbf16, #tpu.memory_space<vmem>>, vector<16x4xbf16>,
    %7 = vector.extract_strided_slice %4 {offsets = [0, 0], sizes = [16, 12], strides = [1, 1]} : vector<16x16xbf16> to vector<16x12xbf16>
    %c0_7 = arith.constant 0 : index
    %c4 = arith.constant 4 : index
    %8 = vector.load %arg11[%c0_7, %c4] : memref<48x16xbf16, #tpu.memory_space<vmem>>, vector<16x12xbf16>
    tpu.vector_store %arg11[%c0_7, %c4], %7 {strides = array<i32>} : memref<48x16xbf16, #tpu.memory_space<vmem>>, vector<16x12xbf16>,
    %c0_8 = arith.constant 0 : index
    %c2 = arith.constant 2 : index
    %9 = vector.load %arg9[%c0_8, %c2] : memref<16x4xbf16, #tpu.memory_space<vmem>>, vector<16x2xbf16>
    %c16 = arith.constant 16 : index
    %c0_9 = arith.constant 0 : index
    %10 = vector.load %arg11[%c16, %c0_9] : memref<48x16xbf16, #tpu.memory_space<vmem>>, vector<16x2xbf16>
    tpu.vector_store %arg11[%c16, %c0_9], %9 {strides = array<i32>} : memref<48x16xbf16, #tpu.memory_space<vmem>>, vector<16x2xbf16>,
    %11 = vector.extract_strided_slice %4 {offsets = [0, 0], sizes = [16, 14], strides = [1, 1]} : vector<16x16xbf16> to vector<16x14xbf16>
    %c16_10 = arith.constant 16 : index
    %c2_11 = arith.constant 2 : index
    %12 = vector.load %arg11[%c16_10, %c2_11] : memref<48x16xbf16, #tpu.memory_space<vmem>>, vector<16x14xbf16>
    tpu.vector_store %arg11[%c16_10, %c2_11], %11 {strides = array<i32>} : memref<48x16xbf16, #tpu.memory_space<vmem>>, vector<16x14xbf16>,
    %c32 = arith.constant 32 : index
    %c0_12 = arith.constant 0 : index
    %13 = vector.load %arg11[%c32, %c0_12] : memref<48x16xbf16, #tpu.memory_space<vmem>>, vector<16x16xbf16>
    tpu.vector_store %arg11[%c32, %c0_12], %4 {strides = array<i32>} : memref<48x16xbf16, #tpu.memory_space<vmem>>, vector<16x16xbf16>,
    %c0_13 = arith.constant 0 : index
    %c0_14 = arith.constant 0 : index
    %14 = vector.load %arg3[%c0_13, %c0_14] : memref<32x48xbf16, #tpu.memory_space<vmem>>, vector<32x48xbf16>
    %c0_15 = arith.constant 0 : index
    %c0_16 = arith.constant 0 : index
    %15 = vector.load %arg11[%c0_15, %c0_16] : memref<48x16xbf16, #tpu.memory_space<vmem>>, vector<48x16xbf16>
    %cst = arith.constant dense<0.000000e+00> : vector<32x16xf32>
    %16 = tpu.matmul %14, %15, %cst {dimension_numbers = #tpu.dot_dimension_numbers<[1], [0], [0], [1], [0, 0, 1, 1], [], []>} : vector<32x48xbf16>, vector<48x16xbf16>, vector<32x16xf32> -> vector<32x16xf32>
    %17 = vector.extract_strided_slice %16 {offsets = [0, 0], sizes = [16, 16], strides = [1, 1]} : vector<32x16xf32> to vector<16x16xf32>
    %c0_17 = arith.constant 0 : index
    %c0_18 = arith.constant 0 : index
    %18 = vector.load %arg4[%c0_17, %c0_18] : memref<16x1xf32, #tpu.memory_space<vmem>>, vector<16x1xf32>
    %19 = vector.broadcast %18 : vector<16x1xf32> to vector<16x16xf32>
    %20 = arith.addf %17, %19 : vector<16x16xf32>
    %cst_19 = arith.constant 0.000000e+00 : f32
    %21 = vector.broadcast %cst_19 : f32 to vector<16x16xf32>
    %22 = arith.maximumf %20, %21 : vector<16x16xf32>
    %23 = vector.extract_strided_slice %16 {offsets = [16, 0], sizes = [16, 16], strides = [1, 1]} : vector<32x16xf32> to vector<16x16xf32>
    %c0_20 = arith.constant 0 : index
    %c0_21 = arith.constant 0 : index
    %24 = vector.load %arg7[%c0_20, %c0_21] : memref<16x1xf32, #tpu.memory_space<vmem>>, vector<16x1xf32>
    %25 = vector.broadcast %24 : vector<16x1xf32> to vector<16x16xf32>
    %26 = arith.addf %23, %25 : vector<16x16xf32>
    %27 = arith.truncf %22 : vector<16x16xf32> to vector<16x16xbf16>
    %c0_22 = arith.constant 0 : index
    %c0_23 = arith.constant 0 : index
    %28 = vector.load %arg10[%c0_22, %c0_23] : memref<16x4xbf16, #tpu.memory_space<vmem>>, vector<16x4xbf16>
    %c0_24 = arith.constant 0 : index
    %c0_25 = arith.constant 0 : index
    %29 = vector.load %arg12[%c0_24, %c0_25] : memref<48x16xbf16, #tpu.memory_space<vmem>>, vector<16x4xbf16>
    tpu.vector_store %arg12[%c0_24, %c0_25], %28 {strides = array<i32>} : memref<48x16xbf16, #tpu.memory_space<vmem>>, vector<16x4xbf16>,
    %30 = vector.extract_strided_slice %27 {offsets = [0, 0], sizes = [16, 12], strides = [1, 1]} : vector<16x16xbf16> to vector<16x12xbf16>
    %c0_26 = arith.constant 0 : index
    %c4_27 = arith.constant 4 : index
    %31 = vector.load %arg12[%c0_26, %c4_27] : memref<48x16xbf16, #tpu.memory_space<vmem>>, vector<16x12xbf16>
    tpu.vector_store %arg12[%c0_26, %c4_27], %30 {strides = array<i32>} : memref<48x16xbf16, #tpu.memory_space<vmem>>, vector<16x12xbf16>,
    %c0_28 = arith.constant 0 : index
    %c2_29 = arith.constant 2 : index
    %32 = vector.load %arg10[%c0_28, %c2_29] : memref<16x4xbf16, #tpu.memory_space<vmem>>, vector<16x2xbf16>
    %c16_30 = arith.constant 16 : index
    %c0_31 = arith.constant 0 : index
    %33 = vector.load %arg12[%c16_30, %c0_31] : memref<48x16xbf16, #tpu.memory_space<vmem>>, vector<16x2xbf16>
    tpu.vector_store %arg12[%c16_30, %c0_31], %32 {strides = array<i32>} : memref<48x16xbf16, #tpu.memory_space<vmem>>, vector<16x2xbf16>,
    %34 = vector.extract_strided_slice %27 {offsets = [0, 0], sizes = [16, 14], strides = [1, 1]} : vector<16x16xbf16> to vector<16x14xbf16>
    %c16_32 = arith.constant 16 : index
    %c2_33 = arith.constant 2 : index
    %35 = vector.load %arg12[%c16_32, %c2_33] : memref<48x16xbf16, #tpu.memory_space<vmem>>, vector<16x14xbf16>
    tpu.vector_store %arg12[%c16_32, %c2_33], %34 {strides = array<i32>} : memref<48x16xbf16, #tpu.memory_space<vmem>>, vector<16x14xbf16>,
    %c32_34 = arith.constant 32 : index
    %c0_35 = arith.constant 0 : index
    %36 = vector.load %arg12[%c32_34, %c0_35] : memref<48x16xbf16, #tpu.memory_space<vmem>>, vector<16x16xbf16>
    tpu.vector_store %arg12[%c32_34, %c0_35], %27 {strides = array<i32>} : memref<48x16xbf16, #tpu.memory_space<vmem>>, vector<16x16xbf16>,
    %c0_36 = arith.constant 0 : index
    %c0_37 = arith.constant 0 : index
    %37 = vector.load %arg5[%c0_36, %c0_37] : memref<16x48xbf16, #tpu.memory_space<vmem>>, vector<16x48xbf16>
    %c0_38 = arith.constant 0 : index
    %c0_39 = arith.constant 0 : index
    %38 = vector.load %arg12[%c0_38, %c0_39] : memref<48x16xbf16, #tpu.memory_space<vmem>>, vector<48x16xbf16>
    %cst_40 = arith.constant dense<0.000000e+00> : vector<16x16xf32>
    %39 = tpu.matmul %37, %38, %cst_40 {dimension_numbers = #tpu.dot_dimension_numbers<[1], [0], [0], [1], [0, 0, 1, 1], [], []>} : vector<16x48xbf16>, vector<48x16xbf16>, vector<16x16xf32> -> vector<16x16xf32>
    %c0_41 = arith.constant 0 : index
    %c0_42 = arith.constant 0 : index
    %40 = vector.load %arg6[%c0_41, %c0_42] : memref<16x1xf32, #tpu.memory_space<vmem>>, vector<16x1xf32>
    %41 = vector.broadcast %40 : vector<16x1xf32> to vector<16x16xf32>
    %42 = arith.addf %39, %41 : vector<16x16xf32>
    %cst_43 = arith.constant 0.000000e+00 : f32
    %43 = vector.broadcast %cst_43 : f32 to vector<16x16xf32>
    %44 = arith.maximumf %42, %43 : vector<16x16xf32>
    %45 = arith.addf %44, %26 : vector<16x16xf32>
    %cst_44 = arith.constant 0.000000e+00 : f32
    %46 = vector.broadcast %cst_44 : f32 to vector<16x16xf32>
    %47 = arith.maximumf %45, %46 : vector<16x16xf32>
    %48 = vector.extract_strided_slice %47 {offsets = [0, 0], sizes = [8, 16], strides = [1, 1]} : vector<16x16xf32> to vector<8x16xf32>
    %c0_45 = arith.constant 0 : index
    %c0_46 = arith.constant 0 : index
    %c0_47 = arith.constant 0 : index
    %49 = vector.load %arg8[%c0_45, %c0_46, %c0_47] : memref<1x8x16xf32, #tpu.memory_space<vmem>>, vector<1x8x16xf32>
    %50 = vector.shape_cast %49 : vector<1x8x16xf32> to vector<8x16xf32>
    %51 = vector.shape_cast %48 : vector<8x16xf32> to vector<1x8x16xf32>
    tpu.vector_store %arg8[%c0_45, %c0_46, %c0_47], %51 {strides = array<i32>} : memref<1x8x16xf32, #tpu.memory_space<vmem>>, vector<1x8x16xf32>,
    %52 = vector.extract_strided_slice %4 {offsets = [0, 12], sizes = [16, 4], strides = [1, 1]} : vector<16x16xbf16> to vector<16x4xbf16>
    %c0_48 = arith.constant 0 : index
    %c0_49 = arith.constant 0 : index
    %53 = vector.load %arg9[%c0_48, %c0_49] : memref<16x4xbf16, #tpu.memory_space<vmem>>, vector<16x4xbf16>
    tpu.vector_store %arg9[%c0_48, %c0_49], %52 {strides = array<i32>} : memref<16x4xbf16, #tpu.memory_space<vmem>>, vector<16x4xbf16>,
    %54 = vector.extract_strided_slice %27 {offsets = [0, 12], sizes = [16, 4], strides = [1, 1]} : vector<16x16xbf16> to vector<16x4xbf16>
    %c0_50 = arith.constant 0 : index
    %c0_51 = arith.constant 0 : index
    %55 = vector.load %arg10[%c0_50, %c0_51] : memref<16x4xbf16, #tpu.memory_space<vmem>>, vector<16x4xbf16>
    tpu.vector_store %arg10[%c0_50, %c0_51], %54 {strides = array<i32>} : memref<16x4xbf16, #tpu.memory_space<vmem>>, vector<16x4xbf16>,
    return
  }
  func.func @transform_0(%arg0: i32, %arg1: i32) -> (i32, i32, i32) {
    %c0_i32 = arith.constant 0 : i32
    %c0_i32_0 = arith.constant 0 : i32
    return %arg0, %c0_i32, %arg1 : i32, i32, i32
  }
  func.func @transform_1(%arg0: i32, %arg1: i32) -> (i32, i32) {
    %c0_i32 = arith.constant 0 : i32
    %c0_i32_0 = arith.constant 0 : i32
    %c0_i32_1 = arith.constant 0 : i32
    return %c0_i32, %c0_i32_0 : i32, i32
  }
  func.func @transform_2(%arg0: i32, %arg1: i32) -> (i32, i32) {
    %c0_i32 = arith.constant 0 : i32
    %c0_i32_0 = arith.constant 0 : i32
    %c0_i32_1 = arith.constant 0 : i32
    return %c0_i32, %c0_i32_0 : i32, i32
  }
  func.func @transform_3(%arg0: i32, %arg1: i32) -> (i32, i32) {
    %c0_i32 = arith.constant 0 : i32
    %c0_i32_0 = arith.constant 0 : i32
    %c0_i32_1 = arith.constant 0 : i32
    return %c0_i32, %c0_i32_0 : i32, i32
  }
  func.func @transform_4(%arg0: i32, %arg1: i32) -> (i32, i32) {
    %c0_i32 = arith.constant 0 : i32
    %c0_i32_0 = arith.constant 0 : i32
    %c0_i32_1 = arith.constant 0 : i32
    return %c0_i32, %c0_i32_0 : i32, i32
  }
  func.func @transform_5(%arg0: i32, %arg1: i32) -> (i32, i32) {
    %c0_i32 = arith.constant 0 : i32
    %c0_i32_0 = arith.constant 0 : i32
    %c0_i32_1 = arith.constant 0 : i32
    return %c0_i32, %c0_i32_0 : i32, i32
  }
  func.func @transform_6(%arg0: i32, %arg1: i32) -> (i32, i32, i32) {
    %c0_i32 = arith.constant 0 : i32
    %c0_i32_0 = arith.constant 0 : i32
    return %arg0, %c0_i32, %arg1 : i32, i32, i32
  }
}

</mosaic_0001>

<bundles_post_ra>
// kernel: tpu_custom_call.1
= control target key start
LH: loop header
LB: loop body
LE: loop exit
PB: predicated region body
PF: predicated region fallthrough
CT: control target
= control target key end

     0   :  { %11 = vsyncpa [#allocation7], 0  ;;  %s995_s0 = inlined_call_operand.vmem [shape: bf16[2,16,16], index: 0, kind: input, shape index: {}]   ;;  %s996_s1 = inlined_call_operand.vmem [shape: bf16[32,48], index: 1, kind: input, shape index: {}]   ;;  %s997_s2 = inlined_call_operand.vmem [shape: f32[16,1], index: 2, kind: input, shape index: {}]   ;;  %s998_s3 = inlined_call_operand.vmem [shape: bf16[16,48], index: 3, kind: input, shape index: {}]   ;;  %s999_s4 = inlined_call_operand.vmem [shape: f32[16,1], index: 4, kind: input, shape index: {}]   ;;  %s1000_s5 = inlined_call_operand.vmem [shape: f32[16,1], index: 5, kind: input, shape index: {}]   ;;  %s1001_s6 = inlined_call_operand.hbm [shape: f32[2,8,16], index: 6, kind: output, shape index: {}]  }
   0x1   :  { %13 = vsyncpa [#allocation7 + $0x1], 0  ;;  %s832_s21 = smov 0   ;;  %s834_s22 = smov 0  }
   0x2   :  { %s836_s23 = smov 0   ;;  %s838_s24 = smov 0  }
   0x3   :  { %s840_s25 = smov 0   ;;  %s842_s26 = smov 0  }
   0x4 LB: > { %s592_s27 = sadd.s32 4294967295, %s787_s26   ;;  %s593_s28 = sadd.s32 4294967294, %s787_s26   ;;  %s787_s26 = sphi %s842_s26, %s19_s26   ;;  %s783_s25 = sphi %s840_s25, %s1008_s25   ;;  %s779_s24 = sphi %s838_s24, %s1007_s24   ;;  %s775_s23 = sphi %s836_s23, %s1006_s23   ;;  %s771_s22 = sphi %s834_s22, %s1005_s22   ;;  %s767_s21 = sphi %s832_s21, %s1004_s21  }
   0x5   : > { %s31_s29 = sadd.s32 1, %s783_s25  ;;  %s173_s30 = sadd.s32 1, %s775_s23 }
   0x6   : > { %p33_p0 = scmp.ge.s32.totalorder %s31_s29, 2  ;;  %p183_p1 = scmp.ne.s32.totalorder %s775_s23, %s771_s22 }
   0x7   : > { %p184_p2 = scmp.eq.s32.totalorder %s592_s27, 1  ;;  %p189_p3 = scmp.ne.s32.totalorder %s771_s22, %s767_s21 }
   0x8   : > { %s1010_s29 = smov (%p33_p0, %s31_s29), 0  ;;  %p190_p5 = scmp.eq.s32.totalorder %s593_s28, 1 }
   0x9   : > { %p872_p4 = por %p184_p2, %p183_p1  ;;  %s168_s8 = ssub.s32 %s783_s25, %s1010_s29 }
   0xa   : > { %p596_p6 = scmp.ge.s32.totalorder %s787_s26, 1  ;;  %p171_p7 = scmp.eq.s32.totalorder %s168_s8, 0 }
   0xb   : > { %p879_p8 = por %p190_p5, %p189_p3  ;;  %p234_p9 = scmp.lt.s32.totalorder %s787_s26, 3 }
   0xc   : > { %s885_s10 = scalar_select %p171_p7, %s775_s23, %s173_s30  }
   0xd   : > { %p235_p10 = pnand %p596_p6, %p234_p9 }
   0xe   : > { %p267_p11 = scmp.lt.s32.totalorder (!%p235_p10), %s779_s24, 1  ;;  %vm280_vm0 = vcmask (!%p235_p10), 31744   ;;  %v789_v0 = vmov (!%p235_p10), 0   ;;  %vm311_vm1 = vcmask (!%p235_p10), 130048   ;;  %s790_s16 = smov (!%p235_p10), 4   ;;  %v706_v3 = vld [vmem:[%s996_s1] sm:$0xff] (!%p235_p10)  }
   0xf   : > { %238 = sbr.rel (%p235_p10) target bundleno = 753 (0x2f1), region = 44  ;;  %281 = vst.msk [vmem:[#allocation2] sm:$0xff] (!%p235_p10), %vm280_vm0, %v789_v0  ;;  %282 = vst.msk [vmem:[#allocation3] sm:$0xff] (!%p235_p10), %vm280_vm0, %v789_v0  ;;  %703 = vset.pattern.permute.xlu1 (!%p235_p10), %v789_v0  ;;  %704 = vset.pattern.permute.xlu0 (!%p235_p10), %v789_v0  ;;  %s791_s17 = smov (!%p235_p10), 2   ;;  %vm330_vm2 = vcmask (!%p235_p10), 392192   ;;  %v385_v4 = vld [vmem:[%s997_s2] sm:$0xff] (!%p235_p10) }
  0x10   : > { %s792_s18 = smov (!%p235_p10), 126   ;;  %627 = vmatprep.mubr.msk.bf16.mxu0 (!%p235_p10), %vm330_vm2, %v706_v3  ;;  %v386_v5 = vld [vmem:[%s997_s2 + $0x8] sm:$0xff] (!%p235_p10)  ;;  %vm296_vm3 = vcmask (!%p235_p10), 130080   ;;  %vm303_vm4 = vcmask (!%p235_p10), 15360   ;;  %vm308_vm5 = vcmask (!%p235_p10), 130064   ;;  %v793_v21 = vmov (!%p235_p10), 0.0  }
  0x11   : > { %v707_v12 = vld [vmem:[%s996_s1 + $0x8] sm:$0xff] (!%p235_p10)   ;;  %631 = vmatprep.subr.bf16.mxu1 (!%p235_p10), %v793_v21  ;;  %v401_v26 = vld [vmem:[%s1000_s5] sm:$0xff] (!%p235_p10)  ;;  %vm794_vm6 = vmmov (!%p235_p10), 0   ;;  %s795_s20 = smov (!%p235_p10), 116   ;;  %s608_s28 = sshll.u32 (!%p235_p10), %s779_s24, 7 }
  0x12   : > { %v432_v27 = vld [vmem:[%s999_s4] sm:$0xff] (!%p235_p10)  ;;  %637 = vmatprep.mubr.msk.bf16.mxu1 (!%p235_p10), %vm794_vm6, %v793_v21  ;;  %s947_s13 = scalar_lea.hbm (!%p235_p10), %s1001_s6, %s608_s28 }
  0x13   : > { %v708_v35 = vld [vmem:[%s998_s3] sm:$0xff] (!%p235_p10)  }
  0x16   : > { %s268_s11 = scalar_select %p267_p11, %s779_s24, 1  ;;  %v298_v2 = vld [vmem:[#allocation2] sm:$0xff]  ;;  %v416_v13 = vld [vmem:[#allocation3] sm:$0xff] }
  0x17   : > { %287 = vst.msk [vmem:[#allocation4] sm:$0xff] %vm280_vm0, %v298_v2  ;;  %410 = vst.msk [vmem:[#allocation5] sm:$0xff] %vm280_vm0, %v416_v13  ;;  %s796_s24 = smov [#allocation6]  }
  0x18   : > { %s611_s12 = sshll.u32 %s268_s11, 3  ;;  %s713_s19 = sshll.u32 %s796_s24, 4  ;;  %s714_s19 = int_to_ptr.vmem [resolvable:$false] %s713_s19 }
  0x19   : > { %s274_s15 = scalar_lea.vmem %s995_s0, %s611_s12 }
  0x1a   : > { %v894_v1 = vld [vmem:[%s274_s15] sm:$0xff]  }
  0x1b   : > { %293 = vrot.lane.b32.xlu0 %v894_v1, %s790_s16  ;;  %312 = vst.msk [vmem:[#allocation4 + $0x10] sm:$0xff] %vm311_vm1, %v894_v1  ;;  %305 = vrot.lane.b32.xlu1 %v894_v1, %s791_s17 }
  0x1f   : > { %300 = vrot.lane.b32.xlu0 %v298_v2, %s792_s18  ;;  %389 = vperm.xlu1 %703, %v385_v4  }
  0x22   : > { %v319_v11 = vld [vmem:[#allocation4 + $0x10] sm:$0xff] }
  0x23   : > { %394 = vperm.xlu0 %704, %v386_v5  }
  0x8d   : > { %v294_v6 = vpop.permute.xlu0 %293  ;;  %v306_v7 = vpop.permute.xlu1 %305 }
  0x8e   : > { %297 = vst.msk [vmem:[#allocation4] sm:$0xff] %vm296_vm3, %v294_v6 }
  0x91   : > { %v301_v8 = vpop.permute.xlu0 %300 }
  0x92   : > { %304 = vst.msk [vmem:[#allocation4 + $0x8] sm:$0xff] %vm303_vm4, %v301_v8 }
  0x93   : > { %309 = vst.msk [vmem:[#allocation4 + $0x8] sm:$0xff] %vm308_vm5, %v306_v7 }
  0x95   : > { %v317_v9 = vld [vmem:[#allocation4] sm:$0xff] }
  0x96   : > { %621 = vmatprep.subr.bf16.mxu0 %v317_v9 }
  0x97   : > { %622 = vmatpush3.bf16.msra.mxu0 %v317_v9 }
  0x9a   : > { %v318_v10 = vld [vmem:[#allocation4 + $0x8] sm:$0xff] }
  0x9b   : > { %623 = vmatprep.subr.bf16.mxu0 %v318_v10 }
  0x9c   : > { %624 = vmatpush3.bf16.msra.mxu0 %v318_v10 }
  0x9d   : > { %625 = vmatprep.subr.bf16.mxu0 %v319_v11 }
  0x9e   : > { %v390_v14 = vpop.permute.xlu1 %389 }
  0xa0   : > { %626 = vmatpush3.bf16.msra.mxu0 %v319_v11 }
  0xa2   : > { %v395_v17 = vpop.permute.xlu0 %394 }
  0xa3   : > { %628 = vmatmul.mubr.msk.bf16.vlgmr.msra.gmra.mrb[0].mxu0 %vm330_vm2, %v707_v12 }
 0x176   : > { %v629_v15 = vpop.f32.mrb[0].mxu0 }
 0x177   : > { %v371_v16 = vpop.f32.mrb[1].mxu0 }
 0x178   : > { %v397_v18 = vadd.f32 %v390_v14, %v371_v16  ;;  %v630_v19 = vpop.f32.mrb[2].mxu0 }
 0x179   : > { %v374_v20 = vpop.f32.mrb[3].mxu0 }
 0x17a   : > { %v398_v22 = vadd.f32 %v395_v17, %v374_v20  ;;  %v399_v23 = vmax.f32 %v397_v18, 0.0 }
 0x17c   : > { %v400_v24 = vmax.f32 %v398_v22, 0.0 }
 0x17e   : > { %v408_v25 = vpack.c.bf16 %v400_v24, %v399_v23 }
 0x180   : > { %426 = vst.msk [vmem:[#allocation5 + $0x10] sm:$0xff] %vm311_vm1, %v408_v25  ;;  %422 = vrot.lane.b32.xlu0 %v408_v25, %s791_s17  ;;  %412 = vrot.lane.b32.xlu1 %v408_v25, %s790_s16 }
 0x184   : > { %404 = vperm.xlu0 %704, %v401_v26   ;;  %418 = vrot.lane.b32.xlu1 %v416_v13, %s792_s18  ;;  %s264_s18 = sand.u32 1, %s771_s22  }
 0x185   : > { %s597_s27 = sshll.u32 %s264_s18, 3  ;;  %s504_s14 = scalar_lea.sflag [#allocation7], %s264_s18 }
 0x186   : > { %s266_s30 = scalar_lea.vmem [#allocation6], %s597_s27 }
 0x187   : > { %v431_v34 = vld [vmem:[#allocation5 + $0x10] sm:$0xff]  ;;  %s518_s8 = sshll.u32 %s266_s30, 4  ;;  %s949_s8 = int_to_ptr.vmem [resolvable:$true] %s518_s8 }
 0x188   : > { %499 = vrot.lane.b32.xlu0 %v408_v25, %s795_s20  ;;  %436 = vperm.xlu1 %703, %v432_v27   ;;  %s709_s15 = scalar_lea.vmem %s949_s8, 128  ;;  %p716_p1 = scmp.lt.s32.totalorder %s949_s8, %s714_s19 }
 0x189   : > { %p710_p12 = scmp.ne.s32.totalorder %s949_s8, %s709_s15 }
 0x18b   : > { %p711_p13 = pnand %p710_p12, %p872_p4 }
 0x18c   : > { %495 = vrot.lane.b32.xlu1 %v894_v1, %s795_s20  ;;  %s715_s20 = scalar_lea.vmem %s714_s19, 256 }
 0x18d   : > { %p712_p0 = pneg %p711_p13  ;;  %p717_p2 = scmp.lt.s32.totalorder %s715_s20, %s709_s15 }
 0x18f   : > { %p718_p3 = por %p717_p2, %p716_p1 }
 0x191   : > { %p719_p5 = pnand %p718_p3, %p712_p0 }
 0x1f2   : > { %v413_v28 = vpop.permute.xlu1 %412  ;;  %v423_v30 = vpop.permute.xlu0 %422 }
 0x1f3   : > { %415 = vst.msk [vmem:[#allocation5] sm:$0xff] %vm296_vm3, %v413_v28 }
 0x1f6   : > { %v419_v29 = vpop.permute.xlu1 %418 }
 0x1f7   : > { %421 = vst.msk [vmem:[#allocation5 + $0x8] sm:$0xff] %vm303_vm4, %v419_v29 }
 0x1f8   : > { %425 = vst.msk [vmem:[#allocation5 + $0x8] sm:$0xff] %vm308_vm5, %v423_v30 }
 0x1fa   : > { %v429_v31 = vld [vmem:[#allocation5] sm:$0xff] }
 0x1fb   : > { %632 = vmatpush3.bf16.msra.mxu1 %v429_v31 }
 0x1fc   : > { %633 = vmatprep.subr.bf16.mxu1 %v793_v21 }
 0x1ff   : > { %v430_v32 = vld [vmem:[#allocation5 + $0x8] sm:$0xff] }
 0x200   : > { %634 = vmatpush3.bf16.msra.mxu1 %v430_v32 }
 0x201   : > { %635 = vmatprep.subr.bf16.mxu1 %v793_v21 }
 0x203   : > { %v405_v33 = vpop.permute.xlu0 %404 }
 0x204   : > { %v407_v36 = vadd.f32 %v629_v15, %v405_v33  ;;  %636 = vmatpush3.bf16.msra.mxu1 %v431_v34 }
 0x207   : > { %v500_v37 = vpop.permute.xlu0 %499  ;;  %638 = vmatmul.mubr.msk.bf16.vlgmr.msra.gmra.mrb[0].mxu1 %vm330_vm2, %v708_v35  ;;  %v437_v38 = vpop.permute.xlu1 %436 }
 0x208   : > { %502 = vst.msk [vmem:[#allocation3] sm:$0xff] %vm280_vm0, %v500_v37 }
 0x20b   : > { %v496_v39 = vpop.permute.xlu1 %495 }
 0x20c   : > { %498 = vst.msk [vmem:[#allocation2] sm:$0xff] %vm280_vm0, %v496_v39 }
 0x2da   : > { %v485_v40 = vpop.f32.mrb[0].mxu1 }
 0x2db   : > { %v486_v41 = vadd.f32 %v485_v40, %v437_v38  ;;  %v639_v42 = vpop.f32.mrb[1].mxu1 }
 0x2dc   : > { %v488_v43 = vpop.f32.mrb[2].mxu1 }
 0x2dd   : > { %v491_v44 = vmax.f32 %v486_v41, 0.0  ;;  %v640_v45 = vpop.f32.mrb[3].mxu1 }
 0x2df   : > { %v492_v46 = vadd.f32 %v491_v44, %v407_v36 }
 0x2e1   : > { %v493_v47 = vmax.f32 %v492_v46, 0.0 }
 0x2e3   : > { %494 = vst.msk [vmem:[%s266_s30] sm:$0xff] %vm311_vm1, %v493_v47 }
 0x2e4   : > { %722 = shalt.err (!%p719_p5)
}
 0x2e5   : > { %s723_s16 = scalar_lea.hbm %s947_s13, 128  ;;  %s727_s27 = scalar_lea.hbm %s1001_s6, 256 }
 0x2e6   : > { %p724_p6 = scmp.ne.s32.totalorder %s947_s13, %s723_s16  ;;  %p728_p10 = scmp.lt.u32.totalorder %s947_s13, %s1001_s6 }
 0x2e7   : > { %p729_p11 = scmp.lt.u32.totalorder %s727_s27, %s723_s16  ;;  %p731_p13 = scmp.lt.u32.totalorder %s723_s16, %s947_s13 }
 0x2e8   : > { %p725_p7 = pnand %p724_p6, %p872_p4 }
 0x2e9   : > { %p730_p12 = por %p729_p11, %p728_p10 }
 0x2ea   : > { %p726_p9 = pneg %p725_p7 }
 0x2eb   : > { %p732_p0 = por %p731_p13, %p730_p12 }
 0x2ed   : > { %p733_p1 = pnand %p732_p0, %p726_p9 }
 0x2ef   : > { %736 = shalt.err (!%p733_p1)
}
 0x2f0   : > { %641 = dma.vmem_to_hbm [thread:$0]  (%p872_p4), %s949_s8, 128, %s947_s13, %s504_s14  }
 0x2f1 PF: > { %p647_p2 = scmp.ge.s32.totalorder %s787_s26, 2  ;;  %s530_s11 = sand.u32 1, %s767_s21  }
 0x2f2   : > { %s531_s12 = scalar_lea.sflag [#allocation7], %s530_s11 }
 0x2f3   : > { %p644_p3 = pnand %p647_p2, %p879_p8 }
 0x2f5   : > { %762 = dma.done.wait (!%p644_p3), %s531_s12, 128  }
 0x2f6   : > { %764 = vsyncadd (!%p644_p3), %s531_s12, 4294967168  ;;  %s19_s26 = sadd.s32 1, %s787_s26   ;;  %s1004_s21 = smov %s771_s22 }
 0x2f7   : > { %p16_p5 = scmp.ge.s32.totalorder %s19_s26, 4   ;;  %s1005_s22 = smov %s775_s23 }
 0x2f8   : > { %s1006_s23 = smov %s885_s10  ;;  %s1007_s24 = smov %s783_s25 }
 0x2f9   : > { %s1008_s25 = smov %s1010_s29  ;;  %18 = sbr.rel (!%p16_p5) target bundleno = 4 (0x4), region = 83 }
 0x300   :  { %536 = vsyncpa [#allocation7], 1 }
 0x301   :  { %538 = vsyncpa [#allocation7 + $0x1], 1 }

</bundles_post_ra>
